<compile_context>
chip_gen: v7x
topology: tpu7x:2x2x1
jax: 0.10.0
libtpu: 0.0.40
codegen_flags: <defaults>
</compile_context>

<pallas_src>
import functools

import jax
import jax.numpy as jnp
from jax.experimental import pallas as pl
from jax.experimental.pallas import tpu as pltpu

EPSILON = 1e-6


# ------------------------------- kernel ---------------------------------------


def _subnetwork_kernel(num_layers, b_real, needs_mask,
                       x_ref, bn0_ref, bnl_ref, w_ref, out_ref, act_ref):
    """Grid = (num_layers,). Per step l: (step 0 only: input BN) -> matmul W_l -> BN_l
    -> ReLU (hidden layers) carried in act_ref; last step writes out_ref."""
    l = pl.program_id(0)
    b_pad = act_ref.shape[0]
    inv_b = 1.0 / float(b_real)

    if needs_mask:
        # Keeps padded batch rows at exactly 0 so they never touch batch stats.
        row_mask = (jax.lax.broadcasted_iota(jnp.int32, (b_pad, 1), 0)
                    < b_real).astype(jnp.float32)

    def batchnorm(h, gb):
        # Training-mode BatchNorm1d folded into one scale/shift (x*scale + shift).
        # One-pass E[x^2]-E[x]^2 variance: one fewer full-slab VPU pass than the
        # centered two-pass form (cancellation risk accepted, see module docstring).
        gamma = gb[0:1, :]
        beta = gb[1:2, :]
        mean = jnp.sum(h, axis=0, keepdims=True) * inv_b          # XLU reduce
        msq = jnp.sum(h * h, axis=0, keepdims=True) * inv_b       # VPU + XLU
        var = jnp.maximum(msq - mean * mean, 0.0)                 # biased variance
        scale = gamma * jax.lax.rsqrt(var + EPSILON)              # rsqrt -> EUP slot
        shift = beta - mean * scale
        return h * scale + shift

    # Grid step 0: input BatchNorm1d(dim) -> activation carry.
    @pl.when(l == 0)
    def _():
        h0 = batchnorm(x_ref[...], bn0_ref[...])
        if needs_mask:
            h0 = h0 * row_mask
        act_ref[...] = h0

    # Layer l: bf16 MXU matmul (f32 accumulation) + folded BN on the f32 result.
    h = jnp.dot(act_ref[...].astype(jnp.bfloat16), w_ref[...],
                preferred_element_type=jnp.float32)
    h = batchnorm(h, bnl_ref[...])

    @pl.when(l < num_layers - 1)            # hidden layers: ReLU, carry forward
    def _():
        a = jnp.maximum(h, 0.0)
        if needs_mask:
            a = a * row_mask
        act_ref[...] = a

    @pl.when(l == num_layers - 1)           # last Dense: activate=False -> store
    def _():
        out_ref[...] = h[:, :out_ref.shape[1]].astype(out_ref.dtype)


# ------------------------------ wrapper ----------------------------------------


def _round_up(n, m):
    return ((n + m - 1) // m) * m


def pack_params(params):
    """One-time packing of parameters into kernel-ready, pre-padded slabs.

    Returns (w_stack, bn0_slab, bn_layers, meta):
      w_stack   : (L, P, P) bf16, zero-padded per-layer weights (W stored [cin, cout])
      bn0_slab  : (2, P) f32, [gamma; beta] of the input BatchNorm
      bn_layers : (L, 2, P) f32, per-layer [gamma; beta]
      meta      : static ints {dim, out_dim, max_pad, num_layers}
    The linear bias is accepted but not packed: training-mode BN subtracts the
    batch mean, which cancels a per-feature bias exactly.
    """
    g0, b0 = params["bn0"]
    layers = params["layers"]
    num_layers = len(layers)

    dim = int(g0.shape[-1])
    feat = [dim] + [int(w.shape[1]) for (w, _, _, _) in layers]
    feat_pad = [_round_up(f, 128) for f in feat]
    max_pad = max(feat_pad)

    # TODO(synk): if layer widths differ so wildly that (L, P, P) padding blows up
    # HBM bytes, keep per-layer weights in pl.ANY and hand-roll make_async_copy
    # double-buffering instead of the stacked layer grid.
    w_stack = jnp.zeros((num_layers, max_pad, max_pad), jnp.bfloat16)
    bn0_slab = jnp.zeros((2, max_pad), jnp.float32)
    bn0_slab = bn0_slab.at[0, :dim].set(jnp.reshape(g0, (-1,)))
    bn0_slab = bn0_slab.at[1, :dim].set(jnp.reshape(b0, (-1,)))
    bn_layers = jnp.zeros((num_layers, 2, max_pad), jnp.float32)

    for i, (w, _b, gamma, beta) in enumerate(layers):
        cin, cout = w.shape
        w_stack = w_stack.at[i, :cin, :cout].set(w.astype(jnp.bfloat16))
        bn_layers = bn_layers.at[i, 0, :cout].set(jnp.reshape(gamma, (-1,)))
        bn_layers = bn_layers.at[i, 1, :cout].set(jnp.reshape(beta, (-1,)))

    meta = dict(dim=dim, out_dim=feat[-1], max_pad=max_pad, num_layers=num_layers)
    return w_stack, bn0_slab, bn_layers, meta


@functools.partial(jax.jit,
                   static_argnames=("dim", "out_dim", "max_pad", "num_layers"))
def _forward_jit(x, w_stack, bn0_slab, bn_layers, *,
                 dim, out_dim, max_pad, num_layers):
    b_real = int(x.shape[0])
    b_pad = _round_up(max(b_real, 1), 8)
    needs_mask = b_pad != b_real
    out_cols = _round_up(out_dim, 128)

    # Only per-call data movement: zero-pad x into the uniform (b_pad, P) slab.
    # (Zero padding is inert: padded gamma/beta are 0 -> padded columns stay 0.)
    x_pad = jnp.zeros((b_pad, max_pad), jnp.float32).at[:b_real, :dim].set(
        x.astype(jnp.float32))

    # ---- generation-aware VMEM budget ----
    act_bytes = b_pad * max_pad * 4
    resident = (b_pad * max_pad * 4            # x slab
                + int(bn0_slab.size) * 4 + int(bn_layers.size) * 4
                + b_pad * out_cols * 4         # output slab
                + act_bytes)                   # activation scratch
    w_block = max_pad * max_pad * 2            # one bf16 weight block
    footprint = resident + 2 * w_block + 4 * act_bytes   # 2 buffered W + live temps
    try:
        phys = int(pltpu.get_tpu_info().vmem_capacity_bytes)
    except Exception:
        phys = 64 << 20                        # conservative (v7x) fallback
    cap = min(phys - (8 << 20), 110 << 20)     # ~56 MiB on v7x, ~110 MiB on v5e/v6e
    vmem_limit = int(min(max(2 * footprint, 16 << 20), cap))
    # TODO(synk): if footprint exceeds `cap` (very large B), add a batch-tile grid
    # axis marked "parallel" with cross-core BN partial-sum exchange (uses both v7x
    # TensorCores) instead of raising the limit; similarly, stack many same-topology
    # subnetworks / batches along M to fill the MXU and amortize launch overhead.

    cost = pl.CostEstimate(
        flops=2 * num_layers * b_pad * max_pad * max_pad,
        transcendentals=(num_layers + 1) * max_pad,
        bytes_accessed=(b_pad * max_pad * 4 + int(bn0_slab.size) * 4
                        + int(bn_layers.size) * 4 + int(w_stack.size) * 2
                        + b_pad * out_cols * 4),
    )

    kernel = functools.partial(_subnetwork_kernel, num_layers, b_real, needs_mask)

    out_pad = pl.pallas_call(
        kernel,
        out_shape=jax.ShapeDtypeStruct((b_pad, out_cols), jnp.float32),
        grid_spec=pltpu.PrefetchScalarGridSpec(
            num_scalar_prefetch=0,
            grid=(num_layers,),
            in_specs=[
                pl.BlockSpec((b_pad, max_pad), lambda l: (0, 0)),           # x (resident)
                pl.BlockSpec((2, max_pad), lambda l: (0, 0)),               # bn0 (resident)
                pl.BlockSpec((None, 2, max_pad), lambda l: (l, 0, 0)),      # bn_l (streamed)
                pl.BlockSpec((None, max_pad, max_pad), lambda l: (l, 0, 0)),  # W_l (streamed)
            ],
            out_specs=pl.BlockSpec((b_pad, out_cols), lambda l: (0, 0)),
            scratch_shapes=[pltpu.VMEM((b_pad, max_pad), jnp.float32)],     # activation carry
        ),
        compiler_params=pltpu.CompilerParams(
            dimension_semantics=("arbitrary",),
            vmem_limit_bytes=vmem_limit),
        cost_estimate=cost,
    )(x_pad, bn0_slab, bn_layers, w_stack)

    return out_pad[:b_real, :out_dim]


def subnetwork_forward(x, packed):
    """x: [B, dim] float32; packed: result of pack_params(params)."""
    w_stack, bn0_slab, bn_layers, meta = packed
    return _forward_jit(x, w_stack, bn0_slab, bn_layers, **meta)


# ------------------------------ init (torch-shaped) ----------------------------


def init_params(key, num_hiddens):
    """Deterministic init matching the torch module's __init__ shapes.

    num_hiddens[0] == config.dim. Linear weight ~ N(0, 5/sqrt(cin+cout)),
    linear bias ~ U(-1/sqrt(cin), 1/sqrt(cin)), BN gamma=1, beta=0.
    """
    dim = num_hiddens[0]
    bn0 = (jnp.ones((1, dim), jnp.float32), jnp.zeros((1, dim), jnp.float32))

    layers = []
    for i in range(1, len(num_hiddens)):
        cin, cout = num_hiddens[i - 1], num_hiddens[i]
        key, kw, kb = jax.random.split(key, 3)
        std = 5.0 / float(cin + cout) ** 0.5
        w = jax.random.normal(kw, (cin, cout), jnp.float32) * std   # [cin, cout]
        bound = 1.0 / float(cin) ** 0.5
        b = jax.random.uniform(kb, (1, cout), jnp.float32, -bound, bound)
        gamma = jnp.ones((1, cout), jnp.float32)
        beta = jnp.zeros((1, cout), jnp.float32)
        layers.append((w, b, gamma, beta))
    return {"bn0": bn0, "layers": layers}


# -------------------------- references (verification) --------------------------


def _bn_train_ref(h, gamma, beta):
    mean = jnp.mean(h, axis=0, keepdims=True)
    var = jnp.mean((h - mean) ** 2, axis=0, keepdims=True)
    return (h - mean) * jax.lax.rsqrt(var + EPSILON) * gamma + beta


def reference_forward_f32(x, params):
    """Exact torch .train()-mode semantics in plain f32 JAX (bias included)."""
    g0, b0 = params["bn0"]
    y = _bn_train_ref(x, g0, b0)
    layers = params["layers"]
    for i, (w, b, gamma, beta) in enumerate(layers):
        y = y @ w + b
        y = _bn_train_ref(y, gamma, beta)
        if i < len(layers) - 1:
            y = jnp.maximum(y, 0.0)
    return y


def reference_forward_kernel_math(x, params):
    """Plain-JAX mirror of the kernel arithmetic (bf16 matmul, folded one-pass BN, no bias)."""
    def bn(h, gamma, beta):
        mean = jnp.mean(h, axis=0, keepdims=True)
        msq = jnp.mean(h * h, axis=0, keepdims=True)
        var = jnp.maximum(msq - mean * mean, 0.0)
        scale = jnp.reshape(gamma, (1, -1)) * jax.lax.rsqrt(var + EPSILON)
        shift = jnp.reshape(beta, (1, -1)) - mean * scale
        return h * scale + shift

    g0, b0 = params["bn0"]
    y = bn(x, g0, b0)
    layers = params["layers"]
    for i, (w, _b, gamma, beta) in enumerate(layers):
        y = jnp.dot(y.astype(jnp.bfloat16), w.astype(jnp.bfloat16),
                    preferred_element_type=jnp.float32)
        y = bn(y, gamma, beta)
        if i < len(layers) - 1:
            y = jnp.maximum(y, 0.0)
    return y


if __name__ == "__main__":
    # config.dim = num_hiddens[0]; small synthetic config
    num_hiddens = [32, 64, 48, 16]
    batch = 8

    key = jax.random.PRNGKey(0)
    kx, kp, kx2 = jax.random.split(key, 3)
    x = jax.random.normal(kx, (batch, num_hiddens[0]), jnp.float32)
    params = init_params(kp, num_hiddens)
    packed = pack_params(params)          # one-time parameter packing (hoisted)

    out = jax.block_until_ready(subnetwork_forward(x, packed))
    assert out.shape == (batch, num_hiddens[-1])

    # Tight check against a plain-JAX mirror of the kernel arithmetic.
    ref_k = reference_forward_kernel_math(x, params)
    assert jnp.allclose(out, ref_k, atol=2e-3, rtol=2e-3), "mismatch vs kernel-math reference"

    # Looser check against exact f32 torch .train() semantics (gap = bf16 matmul rounding).
    ref_f32 = reference_forward_f32(x, params)
    assert jnp.allclose(out, ref_f32, atol=1e-1, rtol=1e-1), "mismatch vs f32 reference"

    # Ragged batch (B % 8 != 0) exercising the padded-row mask path.
    x2 = jax.random.normal(kx2, (6, num_hiddens[0]), jnp.float32)
    out2 = jax.block_until_ready(subnetwork_forward(x2, packed))
    ref2 = reference_forward_kernel_math(x2, params)
    assert out2.shape == (6, num_hiddens[-1])
    assert jnp.allclose(out2, ref2, atol=2e-3, rtol=2e-3), "mismatch on ragged batch"

    print("KERNEL_OK")
</pallas_src>

<mosaic_0001>
module attributes {stable_mosaic.version = 11 : i64} {
  func.func @_subnetwork_kernel(%arg0: i32, %arg1: memref<8x128xf32, #tpu.memory_space<vmem>>, %arg2: memref<2x128xf32, #tpu.memory_space<vmem>>, %arg3: memref<1x2x128xf32, #tpu.memory_space<vmem>>, %arg4: memref<1x128x128xbf16, #tpu.memory_space<vmem>>, %arg5: memref<8x128xf32, #tpu.memory_space<vmem>>, %arg6: memref<8x128xf32, #tpu.memory_space<vmem>>) attributes {dimension_semantics = [#tpu.dimension_semantics<arbitrary>], iteration_bounds = array<i64: 3>, scalar_prefetch = 0 : i64, scratch_operands = 1 : i64, tpu.core_type = #tpu.core_type<tc>, window_params = [{pipeline_mode = #tpu.pipeline_mode<synchronous>, transform_indices = @transform_0, window_bounds = array<i64: 8, 128>}, {pipeline_mode = #tpu.pipeline_mode<synchronous>, transform_indices = @transform_1, window_bounds = array<i64: 2, 128>}, {transform_indices = @transform_2, window_bounds = array<i64: 1, 2, 128>}, {transform_indices = @transform_3, window_bounds = array<i64: 1, 128, 128>}, {pipeline_mode = #tpu.pipeline_mode<synchronous>, transform_indices = @transform_4, window_bounds = array<i64: 8, 128>}]} {
    %c0_i32 = arith.constant 0 : i32
    %0 = arith.cmpi eq, %arg0, %c0_i32 : i32
    %1 = arith.extui %0 : i1 to i32
    %c0_i32_0 = arith.constant 0 : i32
    %2 = arith.cmpi ne, %1, %c0_i32_0 : i32
    scf.if %2 {
      %c0_17 = arith.constant 0 : index
      %c0_18 = arith.constant 0 : index
      %41 = vector.load %arg1[%c0_17, %c0_18] : memref<8x128xf32, #tpu.memory_space<vmem>>, vector<8x128xf32>
      %c0_19 = arith.constant 0 : index
      %c0_20 = arith.constant 0 : index
      %42 = vector.load %arg2[%c0_19, %c0_20] : memref<2x128xf32, #tpu.memory_space<vmem>>, vector<2x128xf32>
      %43 = vector.extract_strided_slice %42 {offsets = [0, 0], sizes = [1, 128], strides = [1, 1]} : vector<2x128xf32> to vector<1x128xf32>
      %44 = vector.extract_strided_slice %42 {offsets = [1, 0], sizes = [1, 128], strides = [1, 1]} : vector<2x128xf32> to vector<1x128xf32>
      %cst_21 = arith.constant dense<0.000000e+00> : vector<128xf32>
      %45 = vector.multi_reduction <add>, %41, %cst_21 [0] : vector<8x128xf32> to vector<128xf32>
      %46 = vector.shape_cast %45 : vector<128xf32> to vector<1x128xf32>
      %cst_22 = arith.constant 1.250000e-01 : f32
      %47 = vector.broadcast %cst_22 : f32 to vector<1x128xf32>
      %48 = arith.mulf %46, %47 : vector<1x128xf32>
      %49 = arith.mulf %41, %41 : vector<8x128xf32>
      %cst_23 = arith.constant dense<0.000000e+00> : vector<128xf32>
      %50 = vector.multi_reduction <add>, %49, %cst_23 [0] : vector<8x128xf32> to vector<128xf32>
      %51 = vector.shape_cast %50 : vector<128xf32> to vector<1x128xf32>
      %cst_24 = arith.constant 1.250000e-01 : f32
      %52 = vector.broadcast %cst_24 : f32 to vector<1x128xf32>
      %53 = arith.mulf %51, %52 : vector<1x128xf32>
      %54 = arith.mulf %48, %48 : vector<1x128xf32>
      %55 = arith.subf %53, %54 : vector<1x128xf32>
      %cst_25 = arith.constant 0.000000e+00 : f32
      %56 = vector.broadcast %cst_25 : f32 to vector<1x128xf32>
      %57 = arith.maximumf %55, %56 : vector<1x128xf32>
      %cst_26 = arith.constant 9.99999997E-7 : f32
      %58 = vector.broadcast %cst_26 : f32 to vector<1x128xf32>
      %59 = arith.addf %57, %58 : vector<1x128xf32>
      %60 = math.rsqrt %59 : vector<1x128xf32>
      %61 = arith.mulf %43, %60 : vector<1x128xf32>
      %62 = arith.mulf %48, %61 : vector<1x128xf32>
      %63 = arith.subf %44, %62 : vector<1x128xf32>
      %64 = vector.broadcast %61 : vector<1x128xf32> to vector<8x128xf32>
      %65 = arith.mulf %41, %64 : vector<8x128xf32>
      %66 = vector.broadcast %63 : vector<1x128xf32> to vector<8x128xf32>
      %67 = arith.addf %65, %66 : vector<8x128xf32>
      %c0_27 = arith.constant 0 : index
      %c0_28 = arith.constant 0 : index
      %68 = vector.load %arg6[%c0_27, %c0_28] : memref<8x128xf32, #tpu.memory_space<vmem>>, vector<8x128xf32>
      tpu.vector_store %arg6[%c0_27, %c0_28], %67 {strides = array<i32>} : memref<8x128xf32, #tpu.memory_space<vmem>>, vector<8x128xf32>,
    } else {
    }
    %c0 = arith.constant 0 : index
    %c0_1 = arith.constant 0 : index
    %3 = vector.load %arg6[%c0, %c0_1] : memref<8x128xf32, #tpu.memory_space<vmem>>, vector<8x128xf32>
    %4 = arith.truncf %3 : vector<8x128xf32> to vector<8x128xbf16>
    %c0_2 = arith.constant 0 : index
    %c0_3 = arith.constant 0 : index
    %c0_4 = arith.constant 0 : index
    %5 = vector.load %arg4[%c0_2, %c0_3, %c0_4] : memref<1x128x128xbf16, #tpu.memory_space<vmem>>, vector<1x128x128xbf16>
    %6 = vector.shape_cast %5 : vector<1x128x128xbf16> to vector<128x128xbf16>
    %cst = arith.constant dense<0.000000e+00> : vector<8x128xf32>
    %7 = tpu.matmul %4, %6, %cst {dimension_numbers = #tpu.dot_dimension_numbers<[1], [0], [0], [1], [0, 0, 1, 1], [], []>} : vector<8x128xbf16>, vector<128x128xbf16>, vector<8x128xf32> -> vector<8x128xf32>
    %c0_5 = arith.constant 0 : index
    %c0_6 = arith.constant 0 : index
    %c0_7 = arith.constant 0 : index
    %8 = vector.load %arg3[%c0_5, %c0_6, %c0_7] : memref<1x2x128xf32, #tpu.memory_space<vmem>>, vector<1x2x128xf32>
    %9 = vector.shape_cast %8 : vector<1x2x128xf32> to vector<2x128xf32>
    %10 = vector.extract_strided_slice %9 {offsets = [0, 0], sizes = [1, 128], strides = [1, 1]} : vector<2x128xf32> to vector<1x128xf32>
    %11 = vector.extract_strided_slice %9 {offsets = [1, 0], sizes = [1, 128], strides = [1, 1]} : vector<2x128xf32> to vector<1x128xf32>
    %cst_8 = arith.constant dense<0.000000e+00> : vector<128xf32>
    %12 = vector.multi_reduction <add>, %7, %cst_8 [0] : vector<8x128xf32> to vector<128xf32>
    %13 = vector.shape_cast %12 : vector<128xf32> to vector<1x128xf32>
    %cst_9 = arith.constant 1.250000e-01 : f32
    %14 = vector.broadcast %cst_9 : f32 to vector<1x128xf32>
    %15 = arith.mulf %13, %14 : vector<1x128xf32>
    %16 = arith.mulf %7, %7 : vector<8x128xf32>
    %cst_10 = arith.constant dense<0.000000e+00> : vector<128xf32>
    %17 = vector.multi_reduction <add>, %16, %cst_10 [0] : vector<8x128xf32> to vector<128xf32>
    %18 = vector.shape_cast %17 : vector<128xf32> to vector<1x128xf32>
    %cst_11 = arith.constant 1.250000e-01 : f32
    %19 = vector.broadcast %cst_11 : f32 to vector<1x128xf32>
    %20 = arith.mulf %18, %19 : vector<1x128xf32>
    %21 = arith.mulf %15, %15 : vector<1x128xf32>
    %22 = arith.subf %20, %21 : vector<1x128xf32>
    %cst_12 = arith.constant 0.000000e+00 : f32
    %23 = vector.broadcast %cst_12 : f32 to vector<1x128xf32>
    %24 = arith.maximumf %22, %23 : vector<1x128xf32>
    %cst_13 = arith.constant 9.99999997E-7 : f32
    %25 = vector.broadcast %cst_13 : f32 to vector<1x128xf32>
    %26 = arith.addf %24, %25 : vector<1x128xf32>
    %27 = math.rsqrt %26 : vector<1x128xf32>
    %28 = arith.mulf %10, %27 : vector<1x128xf32>
    %29 = arith.mulf %15, %28 : vector<1x128xf32>
    %30 = arith.subf %11, %29 : vector<1x128xf32>
    %31 = vector.broadcast %28 : vector<1x128xf32> to vector<8x128xf32>
    %32 = arith.mulf %7, %31 : vector<8x128xf32>
    %33 = vector.broadcast %30 : vector<1x128xf32> to vector<8x128xf32>
    %34 = arith.addf %32, %33 : vector<8x128xf32>
    %c2_i32 = arith.constant 2 : i32
    %35 = arith.cmpi slt, %arg0, %c2_i32 : i32
    %36 = arith.extui %35 : i1 to i32
    %c0_i32_14 = arith.constant 0 : i32
    %37 = arith.cmpi ne, %36, %c0_i32_14 : i32
    scf.if %37 {
      %cst_17 = arith.constant 0.000000e+00 : f32
      %41 = vector.broadcast %cst_17 : f32 to vector<8x128xf32>
      %42 = arith.maximumf %34, %41 : vector<8x128xf32>
      %c0_18 = arith.constant 0 : index
      %c0_19 = arith.constant 0 : index
      %43 = vector.load %arg6[%c0_18, %c0_19] : memref<8x128xf32, #tpu.memory_space<vmem>>, vector<8x128xf32>
      tpu.vector_store %arg6[%c0_18, %c0_19], %42 {strides = array<i32>} : memref<8x128xf32, #tpu.memory_space<vmem>>, vector<8x128xf32>,
    } else {
    }
    %c2_i32_15 = arith.constant 2 : i32
    %38 = arith.cmpi eq, %arg0, %c2_i32_15 : i32
    %39 = arith.extui %38 : i1 to i32
    %c0_i32_16 = arith.constant 0 : i32
    %40 = arith.cmpi ne, %39, %c0_i32_16 : i32
    scf.if %40 {
      %c0_17 = arith.constant 0 : index
      %c0_18 = arith.constant 0 : index
      %41 = vector.load %arg5[%c0_17, %c0_18] : memref<8x128xf32, #tpu.memory_space<vmem>>, vector<8x128xf32>
      tpu.vector_store %arg5[%c0_17, %c0_18], %34 {strides = array<i32>} : memref<8x128xf32, #tpu.memory_space<vmem>>, vector<8x128xf32>,
    } else {
    }
    return
  }
  func.func @transform_0(%arg0: i32) -> (i32, i32) {
    %c0_i32 = arith.constant 0 : i32
    %c0_i32_0 = arith.constant 0 : i32
    %c0_i32_1 = arith.constant 0 : i32
    return %c0_i32, %c0_i32_0 : i32, i32
  }
  func.func @transform_1(%arg0: i32) -> (i32, i32) {
    %c0_i32 = arith.constant 0 : i32
    %c0_i32_0 = arith.constant 0 : i32
    %c0_i32_1 = arith.constant 0 : i32
    return %c0_i32, %c0_i32_0 : i32, i32
  }
  func.func @transform_2(%arg0: i32) -> (i32, i32, i32) {
    %c0_i32 = arith.constant 0 : i32
    %c0_i32_0 = arith.constant 0 : i32
    %c0_i32_1 = arith.constant 0 : i32
    return %arg0, %c0_i32, %c0_i32_0 : i32, i32, i32
  }
  func.func @transform_3(%arg0: i32) -> (i32, i32, i32) {
    %c0_i32 = arith.constant 0 : i32
    %c0_i32_0 = arith.constant 0 : i32
    %c0_i32_1 = arith.constant 0 : i32
    return %arg0, %c0_i32, %c0_i32_0 : i32, i32, i32
  }
  func.func @transform_4(%arg0: i32) -> (i32, i32) {
    %c0_i32 = arith.constant 0 : i32
    %c0_i32_0 = arith.constant 0 : i32
    %c0_i32_1 = arith.constant 0 : i32
    return %c0_i32, %c0_i32_0 : i32, i32
  }
}

</mosaic_0001>

<bundles_post_ra>
// kernel: _forward_jit.1
= control target key start
LH: loop header
LB: loop body
LE: loop exit
PB: predicated region body
PF: predicated region fallthrough
CT: control target
= control target key end

     0   :  { %9 = vsyncpa [#allocation4], 0  ;;  %s884_s0 = inlined_call_operand.vmem [shape: f32[8,128], index: 0, kind: input, shape index: {}]   ;;  %s885_s1 = inlined_call_operand.vmem [shape: f32[2,128], index: 1, kind: input, shape index: {}]   ;;  %s886_s2 = inlined_call_operand.vmem [shape: f32[3,2,128], index: 2, kind: input, shape index: {}]   ;;  %s887_s3 = inlined_call_operand.hbm [shape: bf16[3,128,128], index: 3, kind: input, shape index: {}]   ;;  %s888_s4 = inlined_call_operand.hbm [shape: f32[8,128], index: 4, kind: output, shape index: {}]  }
   0x1   :  { %11 = vsyncpa [#allocation4 + $0x1], 0 }
   0x2   :  { %12 = vsyncpa [#allocation5], 0  ;;  %s731_s15 = smov 0   ;;  %s733_s16 = smov 0  }
   0x3   :  { %s735_s17 = smov 0   ;;  %s737_s18 = smov 0  }
   0x4 LB: > { %s750_s19 = sadd.s32 4294967295, %s698_s18   ;;  %s753_s20 = sadd.s32 1, %s698_s18   ;;  %s698_s18 = sphi %s737_s18, %s895_s18   ;;  %s694_s17 = sphi %s735_s17, %s894_s17   ;;  %s690_s16 = sphi %s733_s16, %s893_s16   ;;  %s686_s15 = sphi %s731_s15, %s892_s15  }
   0x5   : > { %s90_s21 = ssub.s32 %s698_s18, %s753_s20  ;;  %s93_s22 = sadd.s32 1, %s694_s17 }
   0x6   : > { %p91_p0 = scmp.eq.s32.totalorder %s90_s21, 0  ;;  %p100_p1 = scmp.ne.s32.totalorder %s694_s17, %s690_s16 }
   0x7   : > { %p101_p2 = scmp.eq.s32.totalorder %s698_s18, 0  ;;  %p106_p3 = scmp.ne.s32.totalorder %s690_s16, %s686_s15 }
   0x8   : > { %s763_s23 = scalar_select %p91_p0, %s694_s17, %s93_s22  }
   0x9   : > { %p102_p4 = por %p101_p2, %p100_p1  ;;  %p107_p5 = scmp.eq.s32.totalorder %s750_s19, 0 }
   0xa   : > { %p552_p6 = scmp.lt.s32.totalorder %s698_s18, 3  ;;  %s164_s25 = sand.u32 1, %s694_s17  }
   0xb   : > { %p767_p7 = por %p107_p5, %p106_p3  ;;  %s491_s26 = sshll.u32 %s164_s25, 6 }
   0xc   : > { %s512_s27 = sshll.u32 %s698_s18, 10  ;;  %s168_s5 = scalar_lea.vmem [#allocation3], %s491_s26 }
   0xd   : > { %s776_s30 = scalar_lea.hbm %s887_s3, %s512_s27  ;;  %s175_s6 = sshll.u32 %s168_s5, 4  ;;  %s778_s6 = int_to_ptr.vmem [resolvable:$true] %s175_s6 }
   0xe   : > { %p780_p8 = pnand %p552_p6, %p102_p4  ;;  %s785_s8 = scalar_lea.sflag [#allocation4], %s164_s25 }
   0xf   : > { %s604_s9 = scalar_lea.hbm %s776_s30, 1024  ;;  %s609_s12 = scalar_lea.hbm %s887_s3, 3072 }
  0x10   : > { %p605_p10 = scmp.ne.s32.totalorder %s776_s30, %s604_s9  ;;  %p606_p11 = pneg %p780_p8 }
  0x11   : > { %p610_p0 = scmp.lt.u32.totalorder %s776_s30, %s887_s3  ;;  %p611_p1 = scmp.lt.u32.totalorder %s609_s12, %s604_s9 }
  0x12   : > { %p607_p12 = pnand %p606_p11, %p605_p10  ;;  %p613_p3 = scmp.lt.u32.totalorder %s604_s9, %s776_s30 }
  0x13   : > { %p612_p2 = por %p611_p1, %p610_p0 }
  0x14   : > { %p608_p13 = pneg %p607_p12 }
  0x15   : > { %p614_p4 = por %p613_p3, %p612_p2 }
  0x17   : > { %p615_p5 = pnand %p614_p4, %p608_p13 }
  0x19   : > { %618 = shalt.err (!%p615_p5)
}
  0x1a   : > { %s619_s15 = scalar_lea.vmem %s778_s6, 1024  ;;  %s700_s21 = smov [#allocation3]  }
  0x1b   : > { %p620_p6 = scmp.ne.s32.totalorder %s778_s6, %s619_s15  ;;  %s624_s22 = sshll.u32 %s700_s21, 4  ;;  %s625_s22 = int_to_ptr.vmem [resolvable:$false] %s624_s22 }
  0x1c   : > { %s626_s25 = scalar_lea.vmem %s625_s22, 2048  ;;  %p627_p9 = scmp.lt.s32.totalorder %s778_s6, %s625_s22 }
  0x1d   : > { %p622_p10 = pnand %p620_p6, %p606_p11  ;;  %p628_p0 = scmp.lt.s32.totalorder %s626_s25, %s619_s15 }
  0x1f   : > { %p623_p12 = pneg %p622_p10  ;;  %p629_p1 = por %p628_p0, %p627_p9 }
  0x21   : > { %p630_p2 = pnand %p629_p1, %p623_p12 }
  0x23   : > { %633 = shalt.err (!%p630_p2)
}
  0x24   : > { %s701_s26 = smov 64   ;;  %s702_s27 = smov 4  }
  0x25   : > { %551 = dma.hbm_to_vmem [thread:$0]  (!%p780_p8), %s776_s30, 1024, %s778_s6, %s785_s8, %s701_s26, %s701_s26, %s702_s27  }
  0x26   : > { %p183_p11 = scmp.lt.s32.totalorder %s698_s18, 4  ;;  %p891_p13 = scmp.ge.s32.totalorder %s698_s18, 1 }
  0x28   : > { %p184_p3 = pnand %p891_p13, %p183_p11 }
  0x29   : > { %s189_s28 = sand.u32 (!%p184_p3), 1, %s690_s16  }
  0x2a   : > { %187 = sbr.rel (%p184_p3) target bundleno = 426 (0x1aa), region = 36  ;;  %s495_s29 = sshll.u32 (!%p184_p3), %s189_s28, 6 }
  0x2b   : > { %s190_s5 = scalar_lea.sflag (!%p184_p3), [#allocation4], %s189_s28  ;;  %s817_s9 = scalar_lea.vmem (!%p184_p3), [#allocation3], %s495_s29 }
  0x31   : > { %677 = dma.done.wait (%p767_p7), %s190_s5, 1024  }
  0x32   : > { %679 = vsyncadd (%p767_p7), %s190_s5, 4294966272  ;;  %p217_p9 = scmp.lt.s32.totalorder %s750_s19, 2  ;;  %p497_p8 = scmp.ne.s32.totalorder %s750_s19, 0 }
  0x33   : > { %v226_v0 = vld [vmem:[%s884_s0] sm:$0xff] (!%p497_p8)  ;;  %v254_v20 = vlaneseq (!%p497_p8) }
  0x34   : > { %s218_s30 = scalar_select %p217_p9, %s750_s19, 2 }
  0x35   : > { %225 = sbr.rel (%p497_p8) target bundleno = 99 (0x63), region = 44  ;;  %v228_v1 = vrot.slane (!%p497_p8), %v226_v0, 4  ;;  %v235_v2 = vmul.f32 (!%p497_p8), %v226_v0, %v226_v0  ;;  %v255_v21 = vshrl.u32 (!%p497_p8), %v254_v20, 7  ;;  %v227_v22 = vld [vmem:[%s885_s1] sm:$0x3] (!%p497_p8) }
  0x36   : > { %s496_s6 = sshll.u32 %s218_s30, 1 }
  0x37   : > { %s828_s8 = scalar_lea.vmem %s886_s2, %s496_s6  ;;  %v229_v3 = vadd.f32 (!%p497_p8), %v228_v1, %v226_v0  ;;  %v236_v4 = vrot.slane (!%p497_p8), %v235_v2, 4  ;;  %v256_v23 = vsub.s32 (!%p497_p8), 0, %v255_v21  ;;  %v261_v29 = vsub.s32 (!%p497_p8), 1, %v255_v21 }
  0x39   : > { %v230_v5 = vrot.slane (!%p497_p8), %v229_v3, 2  ;;  %v237_v6 = vadd.f32 (!%p497_p8), %v236_v4, %v235_v2 }
  0x3b   : > { %v231_v7 = vadd.f32 (!%p497_p8), %v230_v5, %v229_v3  ;;  %v238_v8 = vrot.slane (!%p497_p8), %v237_v6, 2 }
  0x3d   : > { %v232_v9 = vrot.slane %v231_v7, 1  ;;  %v239_v10 = vadd.f32 %v238_v8, %v237_v6 }
  0x3f   : > { %v233_v11 = vadd.f32 %v232_v9, %v231_v7  ;;  %v240_v12 = vrot.slane %v239_v10, 1 }
  0x41   : > { %v234_v13 = vmul.f32 0.125, %v233_v11  ;;  %v241_v14 = vadd.f32 %v240_v12, %v239_v10 }
  0x43   : > { %v242_v15 = vmul.f32 0.125, %v241_v14  ;;  %v243_v16 = vmul.f32 %v234_v13, %v234_v13 }
  0x45   : > { %v244_v17 = vsub.f32 %v242_v15, %v243_v16 }
  0x47   : > { %v245_v18 = vmax.f32 %v244_v17, 0.0 }
  0x49   : > { %v246_v19 = vadd.f32 1e-06, %v245_v18 }
  0x4b   : > { %592 = vrsqrt.f32 %v246_v19 }
  0x55   : > { %v593_v24 = vpop.eup %592 }
  0x56   : > { %v248_v25 = vmul.f32 %v593_v24, %v227_v22 }
  0x58   : > { %v249_v26 = vmul.f32 %v248_v25, %v234_v13  ;;  %v257_v27 = vrot.slane %v248_v25, %v256_v23 }
  0x5a   : > { %v251_v28 = vrot.slane %v249_v26, 7  ;;  %v258_v31 = vmul.f32 %v257_v27, %v226_v0 }
  0x5c   : > { %v253_v30 = vsub.f32 %v227_v22, %v251_v28 }
  0x5e   : > { %v262_v32 = vrot.slane %v253_v30, %v261_v29 }
  0x60   : > { %v263_v33 = vadd.f32 %v262_v32, %v258_v31 }
  0x62   : > { %264 = vst [vmem:[#allocation2] sm:$0xff] %v263_v33 }
  0x63 PF: > { %v594_v34 = vld [vmem:[%s817_s9] sm:$0xff]   ;;  %v703_v35 = vmov 0.0   ;;  %v595_v36 = vld [vmem:[%s817_s9 + $0x8] sm:$0xff]   ;;  %vm704_vm0 = vmmov 0   ;;  %v596_v37 = vld [vmem:[%s817_s9 + $0x10] sm:$0xff]   ;;  %v398_v4 = vlaneseq  ;;  %p506_p7 = scmp.ge.s32.totalorder %s750_s19, 2 }
  0x64   : > { %522 = vmatprep.subr.bf16.mxu0 %v703_v35  ;;  %538 = vmatprep.mubr.msk.bf16.mxu0 %vm704_vm0, %v703_v35  ;;  %v597_v38 = vld [vmem:[%s817_s9 + $0x18] sm:$0xff]   ;;  %v598_v39 = vld [vmem:[%s817_s9 + $0x20] sm:$0xff]   ;;  %v599_v40 = vld [vmem:[%s817_s9 + $0x28] sm:$0xff]  }
  0x65   : > { %523 = vmatpush3.bf16.msra.mxu0 %v594_v34  ;;  %v600_v41 = vld [vmem:[%s817_s9 + $0x30] sm:$0xff]   ;;  %v601_v42 = vld [vmem:[%s817_s9 + $0x38] sm:$0xff]   ;;  %v399_v5 = vshrl.u32 %v398_v4, 7 }
  0x66   : > { %524 = vmatprep.subr.bf16.mxu0 %v703_v35  ;;  %v371_v6 = vld [vmem:[%s828_s8] sm:$0x3] }
  0x67   : > { %v400_v9 = vsub.s32 0, %v399_v5  ;;  %v405_v13 = vsub.s32 1, %v399_v5 }
  0x69   : > { %525 = vmatpush3.bf16.msra.mxu0 %v595_v36  ;;  %v265_v43 = vld [vmem:[#allocation2] sm:$0xff] }
  0x6a   : > { %526 = vmatprep.subr.bf16.mxu0 %v703_v35  ;;  %v266_v44 = vpack.c.bf16 %v265_v43, %v265_v43 }
  0x6d   : > { %527 = vmatpush3.bf16.msra.mxu0 %v596_v37 }
  0x6e   : > { %528 = vmatprep.subr.bf16.mxu0 %v703_v35 }
  0x71   : > { %529 = vmatpush3.bf16.msra.mxu0 %v597_v38 }
  0x72   : > { %530 = vmatprep.subr.bf16.mxu0 %v703_v35 }
  0x75   : > { %531 = vmatpush3.bf16.msra.mxu0 %v598_v39 }
  0x76   : > { %532 = vmatprep.subr.bf16.mxu0 %v703_v35 }
  0x79   : > { %533 = vmatpush3.bf16.msra.mxu0 %v599_v40 }
  0x7a   : > { %534 = vmatprep.subr.bf16.mxu0 %v703_v35 }
  0x7d   : > { %535 = vmatpush3.bf16.msra.mxu0 %v600_v41 }
  0x7e   : > { %536 = vmatprep.subr.bf16.mxu0 %v703_v35 }
  0x81   : > { %537 = vmatpush3.bf16.msra.mxu0 %v601_v42 }
  0x84   : > { %539 = vmatmul.mubr.bf16.vlgmr.msra.gmra.mrb[0].mxu0 %v266_v44 }
 0x157   : > { %v365_v45 = vpop.f32.mrb[0].mxu0 }
 0x158   : > { %v372_v46 = vrot.slane %v365_v45, 4  ;;  %v379_v47 = vmul.f32 %v365_v45, %v365_v45  ;;  %v540_v48 = vpop.f32.mrb[1].mxu0 }
 0x159   : > { %v368_v49 = vpop.f32.mrb[2].mxu0 }
 0x15a   : > { %v373_v50 = vadd.f32 %v372_v46, %v365_v45  ;;  %v380_v51 = vrot.slane %v379_v47, 4  ;;  %v541_v52 = vpop.f32.mrb[3].mxu0 }
 0x15c   : > { %v374_v53 = vrot.slane %v373_v50, 2  ;;  %v381_v54 = vadd.f32 %v380_v51, %v379_v47 }
 0x15e   : > { %v375_v55 = vadd.f32 %v374_v53, %v373_v50  ;;  %v382_v56 = vrot.slane %v381_v54, 2 }
 0x160   : > { %v376_v57 = vrot.slane %v375_v55, 1  ;;  %v383_v58 = vadd.f32 %v382_v56, %v381_v54 }
 0x162   : > { %v377_v59 = vadd.f32 %v376_v57, %v375_v55  ;;  %v384_v60 = vrot.slane %v383_v58, 1 }
 0x164   : > { %v378_v61 = vmul.f32 0.125, %v377_v59  ;;  %v385_v62 = vadd.f32 %v384_v60, %v383_v58 }
 0x166   : > { %v386_v63 = vmul.f32 0.125, %v385_v62  ;;  %v387_v0 = vmul.f32 %v378_v61, %v378_v61 }
 0x168   : > { %v388_v1 = vsub.f32 %v386_v63, %v387_v0 }
 0x16a   : > { %v389_v2 = vmax.f32 %v388_v1, 0.0 }
 0x16c   : > { %v390_v3 = vadd.f32 1e-06, %v389_v2 }
 0x16e   : > { %602 = vrsqrt.f32 %v390_v3 }
 0x178   : > { %v603_v7 = vpop.eup %602 }
 0x179   : > { %v392_v8 = vmul.f32 %v603_v7, %v371_v6 }
 0x17b   : > { %v393_v10 = vmul.f32 %v392_v8, %v378_v61  ;;  %v401_v12 = vrot.slane %v392_v8, %v400_v9 }
 0x17d   : > { %v395_v11 = vrot.slane %v393_v10, 7  ;;  %v402_v15 = vmul.f32 %v401_v12, %v365_v45  ;;  %411 = sbr.rel (%p506_p7) target bundleno = 392 (0x188), region = 48 }
 0x17f   : > { %v397_v14 = vsub.f32 %v371_v6, %v395_v11 }
 0x181   : > { %v406_v16 = vrot.slane %v397_v14, %v405_v13 }
 0x183   : > { %v407_v17 = vadd.f32 %v406_v16, %v402_v15 }
 0x185   : > { %v412_v18 = vmax.f32 %v407_v17, 0.0 }
 0x187   : > { %413 = vst [vmem:[#allocation2] sm:$0xff] %v412_v18 }
 0x188 PF: > { %p507_p4 = scmp.ne.s32.totalorder %s750_s19, 2 }
 0x189   : > { %418 = vst [vmem:[#allocation6] sm:$0xff] (!%p507_p4), %v407_v17 }
 0x18a   : > { %417 = sbr.rel (%p507_p4) target bundleno = 401 (0x191), region = 52 }
 0x191 PF: > { %p553_p5 = scmp.eq.s32.totalorder %s750_s19, 2  ;;  %s705_s13 = smov [#allocation6]  }
 0x192   : > { %s426_s14 = sshll.u32 %s705_s13, 4  ;;  %s427_s14 = int_to_ptr.vmem [resolvable:$true] %s426_s14 }
 0x193   : > { %s634_s15 = scalar_lea.vmem %s427_s14, 128  ;;  %p641_p0 = scmp.lt.s32.totalorder %s427_s14, %s427_s14 }
 0x194   : > { %p635_p6 = scmp.ne.s32.totalorder %s427_s14, %s634_s15  ;;  %p642_p1 = scmp.lt.s32.totalorder %s634_s15, %s634_s15 }
 0x196   : > { %p636_p10 = pnand %p635_p6, %p553_p5  ;;  %p643_p2 = por %p642_p1, %p641_p0 }
 0x198   : > { %p637_p12 = pneg %p636_p10 }
 0x19a   : > { %p644_p11 = pnand %p643_p2, %p637_p12 }
 0x19c   : > { %647 = shalt.err (!%p644_p11)
}
 0x19d   : > { %s648_s25 = scalar_lea.hbm %s888_s4, 128 }
 0x19e   : > { %p649_p13 = scmp.ne.s32.totalorder %s888_s4, %s648_s25  ;;  %p654_p8 = scmp.lt.u32.totalorder %s648_s25, %s888_s4 }
 0x1a0   : > { %p650_p3 = pnand %p649_p13, %p553_p5 }
 0x1a2   : > { %p651_p9 = pneg %p650_p3 }
 0x1a4   : > { %p656_p7 = pnand %p654_p8, %p651_p9 }
 0x1a6   : > { %659 = shalt.err (!%p656_p7)
}
 0x1a7   : > { %545 = dma.vmem_to_hbm [thread:$0]  (%p553_p5), %s427_s14, 128, %s888_s4, [#allocation5]  }
 0x1a8   : > { %681 = dma.done.wait (%p553_p5), [#allocation5], 128  }
 0x1a9   : > { %683 = vsyncadd (%p553_p5), [#allocation5], 4294967168 }
 0x1aa PF: > { %p15_p4 = scmp.ge.s32.totalorder %s753_s20, 5   ;;  %s892_s15 = smov %s690_s16 }
 0x1ab   : > { %s893_s16 = smov %s694_s17  ;;  %s894_s17 = smov %s763_s23 }
 0x1ac   : > { %s895_s18 = smov %s753_s20  ;;  %17 = sbr.rel (!%p15_p4) target bundleno = 4 (0x4), region = 88 }
 0x1b3   :  { %439 = vsyncpa [#allocation4], 1 }
 0x1b4   :  { %441 = vsyncpa [#allocation4 + $0x1], 1 }
 0x1b5   :  { %442 = vsyncpa [#allocation5], 1 }
 0x1b6   :  { %444 = vsyncpa [#allocation5 + $0x1], 1 }

</bundles_post_ra>
